<compile_context>
chip_gen: v5e
topology: v5e:2x2
jax: 0.10.0
libtpu: 0.0.40
codegen_flags: <defaults>
</compile_context>

<pallas_src>
import numpy as np
import jax
import jax.numpy as jnp
from jax.experimental import pallas as pl
from jax.experimental.pallas import tpu as pltpu


# ----------------------------------------------------------------------------
# Parameter setup (init-time, not the hot path)
# ----------------------------------------------------------------------------
def build_pe(d_model: int, max_len: int = 500) -> jnp.ndarray:
    """Deterministic sin/cos positional-encoding buffer, shape (1, max_len, d_model)."""
    position = np.arange(0, max_len, dtype=np.float32)[:, None]          # (max_len, 1)
    div_term = np.exp(np.arange(0, d_model, 2, dtype=np.float32)
                      * (-np.log(10000.0) / d_model))                    # (ceil(d/2),)
    pe = np.zeros((max_len, d_model), dtype=np.float32)
    pe[:, 0::2] = np.sin(position * div_term)
    pe[:, 1::2] = np.cos(position * div_term[: pe[:, 1::2].shape[1]])
    return jnp.asarray(pe[None, :, :])                                   # (1, max_len, d_model)


# ----------------------------------------------------------------------------
# Kernel
# ----------------------------------------------------------------------------
def _pos_enc_kernel(x_ref, pe_ref, o_ref):
    # x_ref: (tile_b, tile_l) row tile; pe_ref: (1, tile_l), broadcast over rows.
    o_ref[...] = (x_ref[...] + pe_ref[...]).astype(o_ref.dtype)


# ----------------------------------------------------------------------------
# Per-generation sizing
# ----------------------------------------------------------------------------
def _round_up(n: int, m: int) -> int:
    return ((n + m - 1) // m) * m


def _chip_config():
    """(budget_bytes, vmem_limit_bytes_or_None, min_row_steps) per TPU generation."""
    kind = ""
    try:
        kind = jax.devices()[0].device_kind.lower()
    except Exception:
        pass
    if "v7" in kind:
        # v7x: 64 MiB physical VMEM, 2 TensorCores.  Keep the per-step working
        # set modest and force >=2 row tiles so megacore sharding has work.
        return 24 << 20, 32 << 20, 2
    if "v6" in kind:
        # v6e: 128 MiB physical -> raise scoped limit to 64 MiB, use ~56 MiB.
        return 56 << 20, 64 << 20, 1
    if "v5" in kind:
        # v5e: 128 MiB physical, 16 MiB default scoped -> raise to 48 MiB.
        return 40 << 20, 48 << 20, 1
    # Unknown / older chips: conservative budget under every default scoped limit.
    return 12 << 20, None, 1


def _choose_tiles(B, L, itemsize, budget_bytes, sublane, min_row_steps):
    """Pick (tile_b, tile_l) so the double-buffered working set fits budget_bytes.

    Per-step VMEM ~= 2*x_tile + 2*out_tile + 2*pe_row = (4*tile_b + 2)*tile_l*itemsize.
    Returns None if no legal tiling fits (caller falls back to plain JAX).
    """
    def max_rows(tl):
        return (budget_bytes // (tl * itemsize) - 2) // 4

    min_rows = min(B, sublane)                      # smallest legal row tile

    # --- lane tile -----------------------------------------------------
    if L % 128 == 0 and max_rows(L) < min_rows:
        # Full-L rows don't fit: tile the lane axis.  Keep tiles >=512 lanes
        # (measured ~85% of HBM roofline) and a multiple of 128.
        max_tl = budget_bytes // ((4 * min_rows + 2) * itemsize)
        tile_l = (max_tl // 128) * 128
        if tile_l < 512:
            return None
        tile_l = min(tile_l, L)
    else:
        tile_l = L                                  # (8,128) rule: non-multiple L stays whole
        if max_rows(tile_l) < min_rows:
            return None

    # --- row tile (never exceeds the budget by construction) ------------
    tile_b = max_rows(tile_l)
    if tile_b >= B:
        tile_b = B
    else:
        tile_b = max(sublane, (tile_b // sublane) * sublane)

    # v7x megacore: ensure >= min_row_steps row tiles so both TCs get work.
    if min_row_steps > 1 and B > sublane:
        cap = _round_up(pl.cdiv(B, min_row_steps), sublane)
        tile_b = min(tile_b, cap)

    return tile_b, tile_l


# ----------------------------------------------------------------------------
# Wrapper (forward pass)
# ----------------------------------------------------------------------------
def positional_encoding(x: jnp.ndarray, pe: jnp.ndarray, *,
                        min_pallas_bytes: int = 1 << 20,
                        force_pallas: bool = False) -> jnp.ndarray:
    """x: (B, S, D); pe: (1, max_len, D).  Returns x + pe[:, :S] (PyTorch forward)."""
    B, S, D = x.shape
    assert S <= pe.shape[1], f"sequence length {S} exceeds max_len {pe.shape[1]}"
    assert D == pe.shape[2], f"d_model mismatch: x has {D}, pe has {pe.shape[2]}"

    # Keep x's dtype (halves writeback for bf16 activations; identical to the
    # PyTorch result for f32 inputs, which is what this module uses).
    pe_slice = pe[:, :S, :].astype(x.dtype)

    itemsize = jnp.dtype(x.dtype).itemsize
    total_bytes = x.size * itemsize
    if not force_pallas and total_bytes < min_pallas_bytes:
        # Tiny input: pallas_call launch/pipeline overhead dwarfs the work;
        # plain JAX lets XLA fuse the add into neighbouring ops for free.
        return x + pe_slice

    # Lane-dense 2-D views: rows = batch, lanes = S*D.
    L = S * D
    x2 = x.reshape(B, L)
    pe2 = pe_slice.reshape(1, L)

    budget, vmem_limit, min_row_steps = _chip_config()
    sublane = max(8, 32 // itemsize)                # 8 for f32, 16 for bf16, 32 for int8

    tiles = _choose_tiles(B, L, itemsize, budget, sublane, min_row_steps)
    if tiles is None:
        # No legal tiling fits the VMEM budget (e.g. enormous L that is not a
        # multiple of 128): the plain-JAX streaming add is correct and fine.
        return x + pe_slice
    tile_b, tile_l = tiles

    grid = (pl.cdiv(B, tile_b), pl.cdiv(L, tile_l))

    compiler_kwargs = dict(dimension_semantics=("parallel", "parallel"))
    if vmem_limit is not None:
        compiler_kwargs["vmem_limit_bytes"] = vmem_limit

    out2 = pl.pallas_call(
        _pos_enc_kernel,
        out_shape=jax.ShapeDtypeStruct((B, L), x.dtype),
        grid_spec=pltpu.PrefetchScalarGridSpec(
            num_scalar_prefetch=0,
            grid=grid,
            in_specs=[
                pl.BlockSpec((tile_b, tile_l), lambda i, j: (i, j)),  # x row/lane tile
                pl.BlockSpec((1, tile_l), lambda i, j: (0, j)),       # pe: resident across rows
            ],
            out_specs=pl.BlockSpec((tile_b, tile_l), lambda i, j: (i, j)),
        ),
        compiler_params=pltpu.CompilerParams(**compiler_kwargs),
    )(x2, pe2)

    return out2.reshape(B, S, D)


# ----------------------------------------------------------------------------
# Self-test
# ----------------------------------------------------------------------------
if __name__ == "__main__":
    max_len = 500

    # Small shape implied by the module (batch=2, seq=8, d_model=32).
    B, S, D = 2, 8, 32
    key = jax.random.PRNGKey(0)
    x_small = jax.random.normal(key, (B, S, D), dtype=jnp.float32)
    pe = build_pe(D, max_len)
    ref = x_small + pe[:, :S, :]

    # 1) Force the Pallas path on the small input (kernel correctness).
    out = jax.block_until_ready(positional_encoding(x_small, pe, force_pallas=True))
    np.testing.assert_allclose(np.asarray(out), np.asarray(ref), rtol=1e-6, atol=1e-6)

    # 2) Default path on the tiny input takes the plain-JAX fast path.
    out_fast = jax.block_until_ready(positional_encoding(x_small, pe))
    np.testing.assert_allclose(np.asarray(out_fast), np.asarray(ref), rtol=1e-6, atol=1e-6)

    # 3) Larger case (B not a multiple of the sublane count) exercising row tiling.
    B2, S2, D2 = 19, 64, 128
    pe_big = build_pe(D2, max_len)
    x_big = jax.random.normal(jax.random.PRNGKey(0), (B2, S2, D2), dtype=jnp.float32)
    out_big = jax.block_until_ready(positional_encoding(x_big, pe_big, force_pallas=True))
    ref_big = x_big + pe_big[:, :S2, :]
    np.testing.assert_allclose(np.asarray(out_big), np.asarray(ref_big), rtol=1e-6, atol=1e-6)

    print("KERNEL_OK")
</pallas_src>

<mosaic_0001>
module attributes {stable_mosaic.version = 11 : i64} {
  func.func @_pos_enc_kernel(%arg0: i32, %arg1: i32, %arg2: memref<2x256xf32, #tpu.memory_space<vmem>>, %arg3: memref<1x256xf32, #tpu.memory_space<vmem>>, %arg4: memref<2x256xf32, #tpu.memory_space<vmem>>) attributes {dimension_semantics = [#tpu.dimension_semantics<parallel>, #tpu.dimension_semantics<parallel>], iteration_bounds = array<i64: 1, 1>, scalar_prefetch = 0 : i64, scratch_operands = 0 : i64, tpu.core_type = #tpu.core_type<tc>, window_params = [{transform_indices = @transform_0, window_bounds = array<i64: 2, 256>}, {transform_indices = @transform_1, window_bounds = array<i64: 1, 256>}, {transform_indices = @transform_2, window_bounds = array<i64: 2, 256>}]} {
    %c0 = arith.constant 0 : index
    %c0_0 = arith.constant 0 : index
    %0 = vector.load %arg2[%c0, %c0_0] : memref<2x256xf32, #tpu.memory_space<vmem>>, vector<2x256xf32>
    %c0_1 = arith.constant 0 : index
    %c0_2 = arith.constant 0 : index
    %1 = vector.load %arg3[%c0_1, %c0_2] : memref<1x256xf32, #tpu.memory_space<vmem>>, vector<1x256xf32>
    %2 = vector.broadcast %1 : vector<1x256xf32> to vector<2x256xf32>
    %3 = arith.addf %0, %2 : vector<2x256xf32>
    %c0_3 = arith.constant 0 : index
    %c0_4 = arith.constant 0 : index
    %4 = vector.load %arg4[%c0_3, %c0_4] : memref<2x256xf32, #tpu.memory_space<vmem>>, vector<2x256xf32>
    tpu.vector_store %arg4[%c0_3, %c0_4], %3 {strides = array<i32>} : memref<2x256xf32, #tpu.memory_space<vmem>>, vector<2x256xf32>,
    return
  }
  func.func @transform_0(%arg0: i32, %arg1: i32) -> (i32, i32) {
    %c0_i32 = arith.constant 0 : i32
    return %arg0, %arg1 : i32, i32
  }
  func.func @transform_1(%arg0: i32, %arg1: i32) -> (i32, i32) {
    %c0_i32 = arith.constant 0 : i32
    %c0_i32_0 = arith.constant 0 : i32
    return %c0_i32, %arg1 : i32, i32
  }
  func.func @transform_2(%arg0: i32, %arg1: i32) -> (i32, i32) {
    %c0_i32 = arith.constant 0 : i32
    return %arg0, %arg1 : i32, i32
  }
}

</mosaic_0001>

<bundles_post_ra>
// kernel: tpu_custom_call.1
= control target key start
LH: loop header
LB: loop body
LE: loop exit
PB: predicated region body
PF: predicated region fallthrough
CT: control target
= control target key end

     0   :  { %7 = vsyncpa [#allocation3], 0  ;;  %s177_s0 = inlined_call_operand.hbm [shape: f32[2,256], index: 0, kind: input, shape index: {}]   ;;  %s178_s1 = inlined_call_operand.hbm [shape: f32[1,256], index: 1, kind: input, shape index: {}]   ;;  %s179_s2 = inlined_call_operand.hbm [shape: f32[2,256], index: 2, kind: output, shape index: {}]  }
   0x1   :  { %8 = vsyncpa [#allocation6], 0 }
   0x2   :  { %9 = vsyncpa [#allocation4], 0  ;;  %s15_s11 = sshll.u32 %s177_s0, 4  ;;  %s150_s12 = smov [#allocation2]   ;;  %s16_s11 = int_to_ptr.hbm [resolvable:$true] %s15_s11 }
   0x3   :  { %s17_s13 = sshll.u32 %s150_s12, 4  ;;  %s26_s16 = sshll.u32 %s178_s1, 4  ;;  %s18_s13 = int_to_ptr.vmem [resolvable:$true] %s17_s13  ;;  %s27_s16 = int_to_ptr.hbm [resolvable:$true] %s26_s16 }
   0x4   :  { %20 = dma.hbm_to_vmem [thread:$0]  %s16_s11, 64, %s18_s13, [#allocation3]  }
   0x5   :  { %s151_s17 = smov [#allocation5]  }
   0x6   :  { %s28_s18 = sshll.u32 %s151_s17, 4  ;;  %s29_s18 = int_to_ptr.vmem [resolvable:$true] %s28_s18 }
   0x7   :  { %31 = dma.hbm_to_vmem [thread:$0]  %s27_s16, 32, %s29_s18, [#allocation6]  }
   0x8   :  { %144 = dma.done.wait [#allocation3], 64  }
   0x9   :  { %145 = vsyncadd [#allocation3], 4294967232 }
   0xa   :  { %146 = dma.done.wait [#allocation6], 32  }
   0xb   :  { %147 = vsyncadd [#allocation6], 4294967264  ;;  %v41_v0 = vld [vmem:[#allocation5] sm:$0x3]  ;;  %vm46_vm0 = vcmask 1041408   ;;  %s152_s0 = smov [#allocation7]  }
   0xc   :  { %v43_v1 = vperm.slane %v41_v0, 0  ;;  %v44_v2 = vperm.slane %v41_v0, 1  ;;  %v40_v3 = vld [vmem:[#allocation2] sm:$0xf]  ;;  %s56_s19 = sshll.u32 %s152_s0, 4  ;;  %s58_s21 = sshll.u32 %s179_s2, 4  ;;  %s57_s19 = int_to_ptr.vmem [resolvable:$true] %s56_s19  ;;  %s59_s21 = int_to_ptr.hbm [resolvable:$true] %s58_s21 }
   0xe   :  { %v45_v4 = vrot.slane %v44_v2, 6 }
  0x10   :  { %v47_v5 = vsel %vm46_vm0, %v43_v1, %v45_v4 }
  0x11   :  { %v49_v6 = vadd.f32 %v47_v5, %v40_v3 }
  0x13   :  { %50 = vst [vmem:[#allocation7] sm:$0xf] %v49_v6 }
  0x14   :  { %61 = dma.vmem_to_hbm [thread:$0]  %s57_s19, 64, %s59_s21, [#allocation4]  }
  0x15   :  { %148 = dma.done.wait [#allocation4], 64  }
  0x16   :  { %149 = vsyncadd [#allocation4], 4294967232 }
  0x17   :  { %66 = vsyncpa [#allocation3], 1 }
  0x18   :  { %67 = vsyncpa [#allocation6], 1 }
  0x19   :  { %68 = vsyncpa [#allocation4], 1 }

</bundles_post_ra>
